<compile_context>
chip_gen: v7x
topology: tpu7x:2x2x1
jax: 0.10.0
libtpu: 0.0.40
codegen_flags: <defaults>
</compile_context>

<pallas_src>
import functools

import jax
import jax.numpy as jnp
from jax.experimental import pallas as pl
from jax.experimental.pallas import tpu as pltpu

LANE = 128
TILE_R_MAX = 512          # 512 x 128 f32 = 256 KiB per input block
N_CORES = 2               # v7x megacore split; harmless on 1-TC chips
SMOOTH = 1.0


def _round_up(x, m):
    return ((x + m - 1) // m) * m


def _dice_kernel(p_ref, l_ref, out_ref, *, rows, tile_r, steps_per_core, needs_mask):
    c = pl.program_id(0)   # "parallel" core axis
    i = pl.program_id(1)   # "arbitrary" reduction axis

    @pl.when(i == 0)
    def _():
        out_ref[...] = jnp.zeros_like(out_ref)

    p = p_ref[...].astype(jnp.float32)
    l = l_ref[...].astype(jnp.float32)

    if needs_mask:
        row0 = (c * steps_per_core + i) * tile_r
        ridx = jax.lax.broadcasted_iota(jnp.int32, (tile_r, LANE), 0) + row0
        valid = ridx < rows
        p = jnp.where(valid, p, 0.0)
        l = jnp.where(valid, l, 0.0)

    # vreg-aligned partial sums: (tile_r,128) -> (tile_r//8, 8, 128) -> sum axis 0
    inter = (p * l).reshape(tile_r // 8, 8, LANE).sum(axis=0)
    both = (p + l).reshape(tile_r // 8, 8, LANE).sum(axis=0)   # fused sum(p)+sum(l)
    out_ref[0, 0] += inter
    out_ref[0, 1] += both


def dice_loss(probas, labels, smooth=SMOOTH):
    """Pallas implementation of DiceLoss.forward (per_image=False)."""
    total = probas.size
    if total == 0:
        # matches the original `return probas * 0.0` for empty input
        return probas * 0.0

    p_flat = probas.reshape(-1)
    l_flat = labels.reshape(-1)

    rows = total // LANE
    tail = total - rows * LANE

    # <128-element ragged tail: reduce with plain jnp (tiny) instead of padding,
    # which would copy both full arrays in HBM.
    tail_inter = jnp.float32(0.0)
    tail_both = jnp.float32(0.0)
    if tail:
        pt = p_flat[rows * LANE:].astype(jnp.float32)
        lt = l_flat[rows * LANE:].astype(jnp.float32)
        tail_inter = jnp.sum(pt * lt)
        tail_both = jnp.sum(pt) + jnp.sum(lt)

    if rows == 0:
        return (2.0 * tail_inter + smooth) / (tail_both + smooth)

    p2 = (p_flat[: rows * LANE] if tail else p_flat).reshape(rows, LANE)
    l2 = (l_flat[: rows * LANE] if tail else l_flat).reshape(rows, LANE)

    tile_r = min(TILE_R_MAX, _round_up(rows, 8))
    steps = pl.cdiv(rows, tile_r)
    steps_per_core = pl.cdiv(steps, N_CORES)
    needs_mask = (N_CORES * steps_per_core * tile_r) != rows

    def in_idx(c, i):
        # Clamp so a core's trailing (fully masked) steps re-read the last valid
        # block instead of DMA-ing out of bounds.
        return (jnp.minimum(c * steps_per_core + i, steps - 1), 0)

    partials = pl.pallas_call(
        functools.partial(_dice_kernel, rows=rows, tile_r=tile_r,
                          steps_per_core=steps_per_core, needs_mask=needs_mask),
        out_shape=jax.ShapeDtypeStruct((N_CORES, 2, 8, LANE), jnp.float32),
        grid_spec=pltpu.PrefetchScalarGridSpec(
            num_scalar_prefetch=0,
            grid=(N_CORES, steps_per_core),
            in_specs=[
                pl.BlockSpec((tile_r, LANE), in_idx),
                pl.BlockSpec((tile_r, LANE), in_idx),
            ],
            out_specs=pl.BlockSpec((1, 2, 8, LANE), lambda c, i: (c, 0, 0, 0)),
        ),
        compiler_params=pltpu.CompilerParams(
            dimension_semantics=("parallel", "arbitrary")),
    )(p2, l2)

    inter = jnp.sum(partials[:, 0]) + tail_inter
    both = jnp.sum(partials[:, 1]) + tail_both
    return (2.0 * inter + smooth) / (both + smooth)


def dice_loss_ref(probas, labels, smooth=SMOOTH):
    p = probas.astype(jnp.float32).reshape(-1)
    l = labels.astype(jnp.float32).reshape(-1)
    inter = jnp.sum(p * l)
    return (2.0 * inter + smooth) / (jnp.sum(p) + jnp.sum(l) + smooth)


if __name__ == "__main__":
    # Small shapes consistent with the 5-D (B, C, T, H, W) input the module expects.
    B, C, T, H, W = 2, 4, 8, 16, 16
    key = jax.random.PRNGKey(0)
    kp, kl = jax.random.split(key)

    # probas: softmax over the class axis; labels: one-hot-ish 0/1 floats.
    logits = jax.random.normal(kp, (B, C, T, H, W), dtype=jnp.float32)
    probas = jax.nn.softmax(logits, axis=1)
    labels = (jax.random.uniform(kl, (B, C, T, H, W)) > 0.75).astype(jnp.float32)

    out = dice_loss(probas, labels)
    out = jax.block_until_ready(out)

    ref = dice_loss_ref(probas, labels)
    assert jnp.allclose(out, ref, rtol=1e-5, atol=1e-6), (out, ref)
    print("KERNEL_OK")
</pallas_src>

<mosaic_0001>
module attributes {stable_mosaic.version = 11 : i64} {
  func.func @_dice_kernel(%arg0: i32, %arg1: i32, %arg2: memref<128x128xf32, #tpu.memory_space<vmem>>, %arg3: memref<128x128xf32, #tpu.memory_space<vmem>>, %arg4: memref<1x2x8x128xf32, #tpu.memory_space<vmem>>) attributes {dimension_semantics = [#tpu.dimension_semantics<parallel>, #tpu.dimension_semantics<arbitrary>], iteration_bounds = array<i64: 2, 1>, scalar_prefetch = 0 : i64, scratch_operands = 0 : i64, tpu.core_type = #tpu.core_type<tc>, window_params = [{transform_indices = @transform_0, window_bounds = array<i64: 128, 128>}, {transform_indices = @transform_1, window_bounds = array<i64: 128, 128>}, {transform_indices = @transform_2, window_bounds = array<i64: 1, 2, 8, 128>}]} {
    %c0_i32 = arith.constant 0 : i32
    %0 = arith.cmpi eq, %arg1, %c0_i32 : i32
    %1 = arith.extui %0 : i1 to i32
    %c0_i32_0 = arith.constant 0 : i32
    %2 = arith.cmpi ne, %1, %c0_i32_0 : i32
    scf.if %2 {
      %cst_23 = arith.constant 0.000000e+00 : f32
      %35 = vector.broadcast %cst_23 : f32 to vector<1x2x8x128xf32>
      %c0_24 = arith.constant 0 : index
      %c0_25 = arith.constant 0 : index
      %c0_26 = arith.constant 0 : index
      %c0_27 = arith.constant 0 : index
      %36 = vector.load %arg4[%c0_24, %c0_25, %c0_26, %c0_27] : memref<1x2x8x128xf32, #tpu.memory_space<vmem>>, vector<1x2x8x128xf32>
      tpu.vector_store %arg4[%c0_24, %c0_25, %c0_26, %c0_27], %35 {strides = array<i32>} : memref<1x2x8x128xf32, #tpu.memory_space<vmem>>, vector<1x2x8x128xf32>,
    } else {
    }
    %c0 = arith.constant 0 : index
    %c0_1 = arith.constant 0 : index
    %3 = vector.load %arg2[%c0, %c0_1] : memref<128x128xf32, #tpu.memory_space<vmem>>, vector<128x128xf32>
    %c0_2 = arith.constant 0 : index
    %c0_3 = arith.constant 0 : index
    %4 = vector.load %arg3[%c0_2, %c0_3] : memref<128x128xf32, #tpu.memory_space<vmem>>, vector<128x128xf32>
    %c1_i32 = arith.constant 1 : i32
    %5 = arith.muli %arg0, %c1_i32 : i32
    %6 = arith.addi %5, %arg1 : i32
    %c128_i32 = arith.constant 128 : i32
    %7 = arith.muli %6, %c128_i32 : i32
    %8 = tpu.iota {dimensions = array<i32: 0>} : vector<128x128xi32>
    %9 = vector.broadcast %7 : i32 to vector<128x128xi32>
    %10 = arith.addi %8, %9 : vector<128x128xi32>
    %c128_i32_4 = arith.constant 128 : i32
    %11 = vector.broadcast %c128_i32_4 : i32 to vector<128x128xi32>
    %12 = arith.cmpi slt, %10, %11 : vector<128x128xi32>
    %cst = arith.constant 0.000000e+00 : f32
    %13 = vector.broadcast %cst : f32 to vector<128x128xf32>
    %14 = arith.select %12, %3, %13 : vector<128x128xi1>, vector<128x128xf32>
    %cst_5 = arith.constant 0.000000e+00 : f32
    %15 = vector.broadcast %cst_5 : f32 to vector<128x128xf32>
    %16 = arith.select %12, %4, %15 : vector<128x128xi1>, vector<128x128xf32>
    %17 = arith.mulf %14, %16 : vector<128x128xf32>
    %18 = vector.shape_cast %17 : vector<128x128xf32> to vector<16x8x128xf32>
    %cst_6 = arith.constant dense<0.000000e+00> : vector<8x128xf32>
    %19 = vector.multi_reduction <add>, %18, %cst_6 [0] : vector<16x8x128xf32> to vector<8x128xf32>
    %20 = arith.addf %14, %16 : vector<128x128xf32>
    %21 = vector.shape_cast %20 : vector<128x128xf32> to vector<16x8x128xf32>
    %cst_7 = arith.constant dense<0.000000e+00> : vector<8x128xf32>
    %22 = vector.multi_reduction <add>, %21, %cst_7 [0] : vector<16x8x128xf32> to vector<8x128xf32>
    %c0_8 = arith.constant 0 : index
    %c0_9 = arith.constant 0 : index
    %c0_10 = arith.constant 0 : index
    %c0_11 = arith.constant 0 : index
    %23 = vector.load %arg4[%c0_8, %c0_9, %c0_10, %c0_11] : memref<1x2x8x128xf32, #tpu.memory_space<vmem>>, vector<1x1x8x128xf32>
    %24 = vector.shape_cast %23 : vector<1x1x8x128xf32> to vector<8x128xf32>
    %25 = arith.addf %24, %19 : vector<8x128xf32>
    %c0_12 = arith.constant 0 : index
    %c0_13 = arith.constant 0 : index
    %c0_14 = arith.constant 0 : index
    %c0_15 = arith.constant 0 : index
    %26 = vector.load %arg4[%c0_12, %c0_13, %c0_14, %c0_15] : memref<1x2x8x128xf32, #tpu.memory_space<vmem>>, vector<1x1x8x128xf32>
    %27 = vector.shape_cast %26 : vector<1x1x8x128xf32> to vector<8x128xf32>
    %28 = vector.shape_cast %25 : vector<8x128xf32> to vector<1x1x8x128xf32>
    tpu.vector_store %arg4[%c0_12, %c0_13, %c0_14, %c0_15], %28 {strides = array<i32>} : memref<1x2x8x128xf32, #tpu.memory_space<vmem>>, vector<1x1x8x128xf32>,
    %c0_16 = arith.constant 0 : index
    %c1 = arith.constant 1 : index
    %c0_17 = arith.constant 0 : index
    %c0_18 = arith.constant 0 : index
    %29 = vector.load %arg4[%c0_16, %c1, %c0_17, %c0_18] : memref<1x2x8x128xf32, #tpu.memory_space<vmem>>, vector<1x1x8x128xf32>
    %30 = vector.shape_cast %29 : vector<1x1x8x128xf32> to vector<8x128xf32>
    %31 = arith.addf %30, %22 : vector<8x128xf32>
    %c0_19 = arith.constant 0 : index
    %c1_20 = arith.constant 1 : index
    %c0_21 = arith.constant 0 : index
    %c0_22 = arith.constant 0 : index
    %32 = vector.load %arg4[%c0_19, %c1_20, %c0_21, %c0_22] : memref<1x2x8x128xf32, #tpu.memory_space<vmem>>, vector<1x1x8x128xf32>
    %33 = vector.shape_cast %32 : vector<1x1x8x128xf32> to vector<8x128xf32>
    %34 = vector.shape_cast %31 : vector<8x128xf32> to vector<1x1x8x128xf32>
    tpu.vector_store %arg4[%c0_19, %c1_20, %c0_21, %c0_22], %34 {strides = array<i32>} : memref<1x2x8x128xf32, #tpu.memory_space<vmem>>, vector<1x1x8x128xf32>,
    return
  }
  func.func @transform_0(%arg0: i32, %arg1: i32) -> (i32, i32) {
    %c1_i32 = arith.constant 1 : i32
    %0 = arith.muli %arg0, %c1_i32 : i32
    %1 = arith.addi %0, %arg1 : i32
    %c0_i32 = arith.constant 0 : i32
    %2 = arith.minsi %1, %c0_i32 : i32
    %c0_i32_0 = arith.constant 0 : i32
    %c0_i32_1 = arith.constant 0 : i32
    return %2, %c0_i32_0 : i32, i32
  }
  func.func @transform_1(%arg0: i32, %arg1: i32) -> (i32, i32) {
    %c1_i32 = arith.constant 1 : i32
    %0 = arith.muli %arg0, %c1_i32 : i32
    %1 = arith.addi %0, %arg1 : i32
    %c0_i32 = arith.constant 0 : i32
    %2 = arith.minsi %1, %c0_i32 : i32
    %c0_i32_0 = arith.constant 0 : i32
    %c0_i32_1 = arith.constant 0 : i32
    return %2, %c0_i32_0 : i32, i32
  }
  func.func @transform_2(%arg0: i32, %arg1: i32) -> (i32, i32, i32, i32) {
    %c0_i32 = arith.constant 0 : i32
    %c0_i32_0 = arith.constant 0 : i32
    %c0_i32_1 = arith.constant 0 : i32
    %c0_i32_2 = arith.constant 0 : i32
    return %arg0, %c0_i32, %c0_i32_0, %c0_i32_1 : i32, i32, i32, i32
  }
}

</mosaic_0001>

<bundles_post_ra>
// kernel: tpu_custom_call.1
= control target key start
LH: loop header
LB: loop body
LE: loop exit
PB: predicated region body
PF: predicated region fallthrough
CT: control target
= control target key end

     0   :  { %7 = vsyncpa [#allocation3], 0  ;;  %s1165_s0 = inlined_call_operand.hbm [shape: f32[128,128], index: 0, kind: input, shape index: {}]   ;;  %s1166_s1 = inlined_call_operand.hbm [shape: f32[128,128], index: 1, kind: input, shape index: {}]   ;;  %s1167_s2 = inlined_call_operand.hbm [shape: f32[2,2,8,128], index: 2, kind: output, shape index: {}]  }
   0x1   :  { %9 = vsyncpa [#allocation3 + $0x1], 0 }
   0x2   :  { %10 = vsyncpa [#allocation6], 0 }
   0x3   :  { %12 = vsyncpa [#allocation6 + $0x1], 0 }
   0x4   :  { %13 = vsyncpa [#allocation4], 0 }
   0x5   :  { %15 = vsyncpa [#allocation4 + $0x1], 0  ;;  %s861_s9 = smov 0   ;;  %s863_s10 = smov 0  }
   0x6   :  { %s865_s11 = smov 0   ;;  %s867_s12 = smov 0  }
   0x7   :  { %s869_s13 = smov 0   ;;  %s871_s14 = smov 0  }
   0x8   :  { %s873_s15 = smov 0   ;;  %s875_s16 = smov 0  }
   0x9 LB: > { %s549_s17 = sadd.s32 4294967295, %s837_s16   ;;  %s550_s18 = sadd.s32 4294967294, %s837_s16   ;;  %s837_s16 = sphi %s875_s16, %s21_s16   ;;  %s833_s15 = sphi %s873_s15, %s1186_s15   ;;  %s829_s14 = sphi %s871_s14, %s1185_s14   ;;  %s825_s13 = sphi %s869_s13, %s1155_s13   ;;  %s821_s12 = sphi %s867_s12, %s1184_s12   ;;  %s817_s11 = sphi %s865_s11, %s1183_s11   ;;  %s813_s10 = sphi %s863_s10, %s1182_s10   ;;  %s809_s9 = sphi %s861_s9, %s1181_s9  }
   0xa   : > { %s33_s19 = sadd.s32 1, %s833_s15  ;;  %p806_p1 = scmp.ne.s32.totalorder %s825_s13, 0 }
   0xb   : > { %p35_p0 = scmp.ge.s32.totalorder %s33_s19, 2  ;;  %p54_p2 = scmp.eq.s32.totalorder %s837_s16, 0 }
   0xc   : > { %p59_p3 = scmp.ne.s32.totalorder %s825_s13, %s821_s12  ;;  %p60_p5 = scmp.eq.s32.totalorder %s549_s17, 0 }
   0xd   : > { %s1188_s19 = smov (%p35_p0, %s33_s19), 0  ;;  %p907_p4 = por %p806_p1, %p54_p2 }
   0xe   : > { %p911_p6 = por %p60_p5, %p59_p3  ;;  %s101_s22 = ssub.s32 %s833_s15, %s1188_s19 }
   0xf   : > { %p102_p7 = scmp.eq.s32.totalorder %s101_s22, 0  ;;  %s104_s23 = sadd.s32 1, %s817_s11 }
  0x10   : > { %s1171_s21 = scalar_select %p911_p6, 1, 0 }
  0x11   : > { %s919_s24 = scalar_select %p102_p7, %s817_s11, %s104_s23  }
  0x12   : > { %p114_p8 = scmp.ne.s32.totalorder %s817_s11, %s813_s10  ;;  %p115_p9 = scmp.eq.s32.totalorder %s549_s17, 1 }
  0x13   : > { %p120_p10 = scmp.ne.s32.totalorder %s813_s10, %s809_s9  ;;  %p121_p11 = scmp.eq.s32.totalorder %s550_s18, 1 }
  0x14   : > { %p925_p12 = por %p115_p9, %p114_p8  ;;  %p591_p1 = scmp.lt.s32.totalorder %s837_s16, 2 }
  0x15   : > { %p930_p0 = por %p121_p11, %p120_p10  ;;  %s839_s27 = smov [#allocation2]  }
  0x16   : > { %s1172_s25 = scalar_select %p925_p12, 1, 0 }
  0x17   : > { %s1173_s26 = scalar_select %p930_p0, 1, 0 }
  0x18   : > { %s155_s28 = sshll.u32 %s839_s27, 4  ;;  %p937_p2 = pnand %p591_p1, %p907_p4  ;;  %s156_s28 = int_to_ptr.vmem [resolvable:$true] %s155_s28 }
  0x19   : > { %s670_s4 = scalar_lea.hbm %s1165_s0, 2048 }
  0x1a   : > { %p671_p3 = scmp.ne.s32.totalorder %s1165_s0, %s670_s4  ;;  %p672_p5 = pneg %p937_p2 }
  0x1b   : > { %p677_p8 = scmp.lt.u32.totalorder %s670_s4, %s670_s4  ;;  %p679_p9 = scmp.lt.u32.totalorder %s670_s4, %s1165_s0 }
  0x1c   : > { %p673_p7 = pnand %p672_p5, %p671_p3 }
  0x1d   : > { %p680_p10 = por %p679_p9, %p677_p8 }
  0x1e   : > { %p674_p4 = pneg %p673_p7 }
  0x20   : > { %p681_p11 = pnand %p680_p10, %p674_p4 }
  0x22   : > { %684 = shalt.err (!%p681_p11)
}
  0x23   : > { %s685_s12 = scalar_lea.vmem %s156_s28, 2048  ;;  %s692_s17 = scalar_lea.vmem %s156_s28, 4096 }
  0x24   : > { %p686_p1 = scmp.ne.s32.totalorder %s156_s28, %s685_s12  ;;  %p693_p12 = scmp.lt.s32.totalorder %s156_s28, %s156_s28 }
  0x25   : > { %p694_p6 = scmp.lt.s32.totalorder %s692_s17, %s685_s12 }
  0x26   : > { %p688_p13 = pnand %p686_p1, %p672_p5 }
  0x27   : > { %p695_p3 = por %p694_p6, %p693_p12 }
  0x28   : > { %p689_p0 = pneg %p688_p13 }
  0x2a   : > { %p696_p7 = pnand %p695_p3, %p689_p0 }
  0x2c   : > { %699 = shalt.err (!%p696_p7)
}
  0x2d   : > { %s840_s18 = smov 128   ;;  %s841_s20 = smov 8  }
  0x2e   : > { %583 = dma.hbm_to_vmem [thread:$0]  (!%p937_p2), %s1165_s0, 2048, %s156_s28, [#allocation3], %s840_s18, %s840_s18, %s841_s20  }
  0x2f   : > { %p559_p13 = scmp.ge.s32.totalorder %s837_s16, 1  ;;  %p187_p4 = scmp.lt.s32.totalorder %s837_s16, 3 }
  0x30   : > { %s842_s30 = smov [#allocation5]   ;;  %s700_s6 = scalar_lea.hbm %s1166_s1, 2048 }
  0x31   : > { %p968_p8 = pnand %p559_p13, %p187_p4  ;;  %s179_s3 = sshll.u32 %s842_s30, 4  ;;  %s180_s3 = int_to_ptr.vmem [resolvable:$true] %s179_s3 }
  0x32   : > { %p701_p6 = scmp.ne.s32.totalorder %s1166_s1, %s700_s6  ;;  %p707_p9 = scmp.lt.u32.totalorder %s700_s6, %s700_s6 }
  0x33   : > { %s1175_s27 = scalar_select %p968_p8, 1, 0 }
  0x34   : > { %p703_p12 = pnand %p701_p6, %p672_p5  ;;  %p709_p10 = scmp.lt.u32.totalorder %s700_s6, %s1166_s1 }
  0x36   : > { %p704_p0 = pneg %p703_p12  ;;  %p710_p11 = por %p709_p10, %p707_p9 }
  0x38   : > { %p711_p1 = pnand %p710_p11, %p704_p0 }
  0x3a   : > { %714 = shalt.err (!%p711_p1)
}
  0x3b   : > { %s715_s17 = scalar_lea.vmem %s180_s3, 2048  ;;  %s722_s22 = scalar_lea.vmem %s180_s3, 4096 }
  0x3c   : > { %p716_p3 = scmp.ne.s32.totalorder %s180_s3, %s715_s17  ;;  %p723_p4 = scmp.lt.s32.totalorder %s180_s3, %s180_s3 }
  0x3d   : > { %p724_p8 = scmp.lt.s32.totalorder %s722_s22, %s715_s17 }
  0x3e   : > { %p718_p7 = pnand %p716_p3, %p672_p5 }
  0x3f   : > { %p725_p6 = por %p724_p8, %p723_p4 }
  0x40   : > { %p719_p13 = pneg %p718_p7 }
  0x42   : > { %p726_p12 = pnand %p725_p6, %p719_p13 }
  0x44   : > { %729 = shalt.err (!%p726_p12)
}
  0x45   : > { %586 = dma.hbm_to_vmem [thread:$0]  (!%p937_p2), %s1166_s1, 2048, %s180_s3, [#allocation6], %s840_s18, %s840_s18, %s841_s20  }
  0x46   : > { %p1176_p0 = scmp.ne.s32.totalorder %s1175_s27, 0 }
  0x47   : > { %s193_s4 = sand.u32 (!%p1176_p0), 1, %s825_s13   ;;  %p1177_p5 = scmp.ne.s32.totalorder (!%p1176_p0), %s1171_s21, 0 }
  0x48   : > { %191 = sbr.rel (%p1176_p0) target bundleno = 146 (0x92), region = 28  ;;  %s560_s5 = sshll.u32 (!%p1176_p0), %s193_s4, 7 }
  0x49   : > { %s194_s6 = scalar_lea.sflag (!%p1176_p0), [#allocation3], %s193_s4  ;;  %s998_s7 = scalar_lea.vmem (!%p1176_p0), [#allocation2], %s560_s5 }
  0x4f   : > { %795 = dma.done.wait (%p1177_p5), %s194_s6, 2048  }
  0x50   : > { %797 = vsyncadd (%p1177_p5), %s194_s6, 4294965248  ;;  %s203_s29 = scalar_lea.sflag [#allocation6], %s193_s4  ;;  %s1004_s8 = scalar_lea.vmem [#allocation5], %s560_s5 }
  0x51   : > { %799 = dma.done.wait (%p1177_p5), %s203_s29, 2048  }
  0x52   : > { %801 = vsyncadd (%p1177_p5), %s203_s29, 4294965248  ;;  %v280_v0 = vlaneseq  ;;  %s563_s18 = sshll.u32 %s829_s14, 7  ;;  %v246_v10 = vld [vmem:[%s998_s7] sm:$0xff]  ;;  %v247_v11 = vld [vmem:[%s998_s7 + $0x8] sm:$0xff]  ;;  %s229_s21 = sand.u32 1, %s813_s10  }
  0x53   : > { %v1014_v3 = vstv %s563_s18  ;;  %v262_v12 = vld [vmem:[%s1004_s8] sm:$0xff]  ;;  %v263_v13 = vld [vmem:[%s1004_s8 + $0x8] sm:$0xff]  ;;  %v248_v17 = vld [vmem:[%s998_s7 + $0x10] sm:$0xff]  ;;  %s562_s20 = sshll.u32 %s229_s21, 4  ;;  %s573_s27 = sshll.u32 %s829_s14, 8 }
  0x54   : > { %v1010_v1 = vshrl.u32 %v280_v0, 7  ;;  %v264_v18 = vld [vmem:[%s1004_s8 + $0x10] sm:$0xff]  ;;  %v249_v25 = vld [vmem:[%s998_s7 + $0x18] sm:$0xff]  ;;  %v250_v34 = vld [vmem:[%s998_s7 + $0x20] sm:$0xff]  ;;  %s231_s3 = scalar_lea.vmem [#allocation7], %s562_s20  ;;  %s1109_s22 = scalar_lea.hbm %s1167_s2, %s573_s27 }
  0x55   : > { %v265_v26 = vld [vmem:[%s1004_s8 + $0x18] sm:$0xff]  ;;  %v266_v35 = vld [vmem:[%s1004_s8 + $0x20] sm:$0xff]  ;;  %v251_v43 = vld [vmem:[%s998_s7 + $0x28] sm:$0xff]  ;;  %s445_s28 = sshll.u32 %s231_s3, 4  ;;  %s1113_s23 = scalar_lea.sflag [#allocation4], %s229_s21  ;;  %s1111_s28 = int_to_ptr.vmem [resolvable:$true] %s445_s28 }
  0x56   : > { %v282_v2 = vadd.s32 8, %v1010_v1  ;;  %v283_v4 = vadd.s32 16, %v1010_v1  ;;  %v284_v5 = vadd.s32 24, %v1010_v1  ;;  %v298_v6 = vadd.s32 %v1014_v3, %v1010_v1  ;;  %v267_v44 = vld [vmem:[%s1004_s8 + $0x28] sm:$0xff]  ;;  %v252_v51 = vld [vmem:[%s998_s7 + $0x30] sm:$0xff]  ;;  %v253_v61 = vld [vmem:[%s998_s7 + $0x38] sm:$0xff] }
  0x57   : > { %v285_v8 = vadd.s32 32, %v1010_v1  ;;  %v286_v14 = vadd.s32 40, %v1010_v1  ;;  %v287_v16 = vadd.s32 48, %v1010_v1  ;;  %v288_v19 = vadd.s32 56, %v1010_v1  ;;  %v268_v52 = vld [vmem:[%s1004_s8 + $0x30] sm:$0xff]  ;;  %v269_v62 = vld [vmem:[%s1004_s8 + $0x38] sm:$0xff] }
  0x58   : > { %v299_v7 = vadd.s32 %v1014_v3, %v282_v2  ;;  %v300_v9 = vadd.s32 %v1014_v3, %v283_v4  ;;  %v301_v15 = vadd.s32 %v1014_v3, %v284_v5  ;;  %vm314_vm0 = vcmp.lt.s32.totalorder %v298_v6, 128  ;;  %s730_s30 = scalar_lea.vmem %s1111_s28, 256  ;;  %p1178_p8 = scmp.ne.s32.totalorder %s1172_s25, 0 }
  0x59   : > { %v302_v20 = vadd.s32 %v1014_v3, %v285_v8  ;;  %v330_v21 = vsel %vm314_vm0, %v246_v10, 0.0  ;;  %v346_v23 = vsel %vm314_vm0, %v262_v12, 0.0  ;;  %v289_v27 = vadd.s32 64, %v1010_v1  ;;  %p731_p2 = scmp.ne.s32.totalorder %s1111_s28, %s730_s30  ;;  %s843_s14 = smov [#allocation7]  }
  0x5a   : > { %vm315_vm1 = vcmp.lt.s32.totalorder %v299_v7, 128  ;;  %vm316_vm2 = vcmp.lt.s32.totalorder %v300_v9, 128  ;;  %v290_v28 = vadd.s32 72, %v1010_v1  ;;  %v303_v29 = vadd.s32 %v1014_v3, %v286_v14  ;;  %v270_v7 = vld [vmem:[%s1004_s8 + $0x40] sm:$0xff]  ;;  %s734_s4 = sshll.u32 %s843_s14, 4  ;;  %s735_s4 = int_to_ptr.vmem [resolvable:$false] %s734_s4 }
  0x5b   : > { %v331_v22 = vsel %vm315_vm1, %v247_v11, 0.0  ;;  %v347_v24 = vsel %vm315_vm1, %v263_v13, 0.0  ;;  %vm317_vm3 = vcmp.lt.s32.totalorder %v301_v15, 128  ;;  %v291_v30 = vadd.s32 80, %v1010_v1  ;;  %v255_v15 = vld [vmem:[%s998_s7 + $0x48] sm:$0xff]  ;;  %p732_p9 = pnand %p731_p2, %p1178_p8  ;;  %s736_s5 = scalar_lea.vmem %s735_s4, 512 }
  0x5c   : > { %v304_v31 = vadd.s32 %v1014_v3, %v287_v16  ;;  %v332_v32 = vsel %vm316_vm2, %v248_v17, 0.0  ;;  %v348_v33 = vsel %vm316_vm2, %v264_v18, 0.0  ;;  %v292_v36 = vadd.s32 88, %v1010_v1  ;;  %v271_v16 = vld [vmem:[%s1004_s8 + $0x48] sm:$0xff]  ;;  %p737_p11 = scmp.lt.s32.totalorder %s1111_s28, %s735_s4  ;;  %p738_p1 = scmp.lt.s32.totalorder %s736_s5, %s730_s30 }
  0x5d   : > { %vm318_vm4 = vcmp.lt.s32.totalorder %v302_v20, 128  ;;  %v362_v37 = vmul.f32 %v346_v23, %v330_v21  ;;  %v363_v38 = vmul.f32 %v347_v24, %v331_v22  ;;  %v293_v39 = vadd.s32 96, %v1010_v1  ;;  %p733_p10 = pneg %p732_p9 }
  0x5e   : > { %v294_v40 = vadd.s32 104, %v1010_v1  ;;  %v333_v41 = vsel %vm317_vm3, %v249_v25, 0.0  ;;  %v349_v42 = vsel %vm317_vm3, %v265_v26, 0.0  ;;  %v1049_v45 = vadd.s32 112, %v1010_v1  ;;  %v272_v25 = vld [vmem:[%s1004_s8 + $0x50] sm:$0xff]  ;;  %p739_p3 = por %p738_p1, %p737_p11 }
  0x5f   : > { %v305_v46 = vadd.s32 %v1014_v3, %v288_v19  ;;  %vm319_vm5 = vcmp.lt.s32.totalorder %v303_v29, 128  ;;  %v364_v47 = vmul.f32 %v348_v33, %v332_v32  ;;  %v306_v48 = vadd.s32 %v1014_v3, %v289_v27 }
  0x60   : > { %vm320_vm6 = vcmp.lt.s32.totalorder %v304_v31, 128  ;;  %v334_v49 = vsel %vm318_vm4, %v250_v34, 0.0  ;;  %v350_v50 = vsel %vm318_vm4, %v266_v35, 0.0  ;;  %v365_v53 = vmul.f32 %v349_v42, %v333_v41  ;;  %v273_v34 = vld [vmem:[%s1004_s8 + $0x58] sm:$0xff]  ;;  %p740_p7 = pnand %p739_p3, %p733_p10 }
  0x61   : > { %v378_v54 = vadd.f32 %v363_v38, %v362_v37  ;;  %v393_v55 = vadd.f32 %v346_v23, %v330_v21  ;;  %v394_v56 = vadd.f32 %v347_v24, %v331_v22  ;;  %v296_v57 = vadd.s32 120, %v1010_v1  ;;  %v254_v1 = vld [vmem:[%s998_s7 + $0x40] sm:$0xff]  ;;  %v256_v24 = vld [vmem:[%s998_s7 + $0x50] sm:$0xff] }
  0x62   : > { %v307_v58 = vadd.s32 %v1014_v3, %v290_v28  ;;  %v335_v59 = vsel %vm319_vm5, %v251_v43, 0.0  ;;  %v351_v60 = vsel %vm319_vm5, %v267_v44, 0.0  ;;  %vm321_vm7 = vcmp.lt.s32.totalorder %v305_v46, 128  ;;  %v274_v43 = vld [vmem:[%s1004_s8 + $0x60] sm:$0xff] }
  0x63   : > { %v366_v63 = vmul.f32 %v350_v50, %v334_v49  ;;  %v379_v0 = vadd.f32 %v378_v54, %v364_v47  ;;  %v395_v2 = vadd.f32 %v348_v33, %v332_v32  ;;  %v308_v4 = vadd.s32 %v1014_v3, %v291_v30  ;;  %v257_v33 = vld [vmem:[%s998_s7 + $0x58] sm:$0xff] }
  0x64   : > { %vm322_vm8 = vcmp.lt.s32.totalorder %v306_v48, 128  ;;  %v336_v5 = vsel %vm320_vm6, %v252_v51, 0.0  ;;  %v352_v6 = vsel %vm320_vm6, %v268_v52, 0.0  ;;  %v367_v8 = vmul.f32 %v351_v60, %v335_v59  ;;  %v259_v51 = vld [vmem:[%s998_s7 + $0x68] sm:$0xff] }
  0x65   : > { %v380_v9 = vadd.f32 %v379_v0, %v365_v53  ;;  %v396_v10 = vadd.f32 %v349_v42, %v333_v41  ;;  %v409_v11 = vadd.f32 %v394_v56, %v393_v55  ;;  %v309_v12 = vadd.s32 %v1014_v3, %v292_v36  ;;  %v258_v42 = vld [vmem:[%s998_s7 + $0x60] sm:$0xff]  ;;  %v275_v52 = vld [vmem:[%s1004_s8 + $0x68] sm:$0xff] }
  0x66   : > { %vm323_vm9 = vcmp.lt.s32.totalorder %v307_v58, 128  ;;  %v337_v13 = vsel %vm321_vm7, %v253_v61, 0.0  ;;  %v353_v14 = vsel %vm321_vm7, %v269_v62, 0.0  ;;  %v368_v17 = vmul.f32 %v352_v6, %v336_v5 }
  0x67   : > { %v381_v18 = vadd.f32 %v380_v9, %v366_v63  ;;  %v397_v19 = vadd.f32 %v350_v50, %v334_v49  ;;  %v410_v20 = vadd.f32 %v409_v11, %v395_v2  ;;  %v310_v21 = vadd.s32 %v1014_v3, %v293_v39 }
  0x68   : > { %vm324_vm10 = vcmp.lt.s32.totalorder %v308_v4, 128  ;;  %v338_v22 = vsel %vm322_vm8, %v254_v1, 0.0  ;;  %v354_v23 = vsel %vm322_vm8, %v270_v7, 0.0  ;;  %v369_v26 = vmul.f32 %v353_v14, %v337_v13  ;;  %v261_v4 = vld [vmem:[%s998_s7 + $0x78] sm:$0xff] }
  0x69   : > { %v382_v27 = vadd.f32 %v381_v18, %v367_v8  ;;  %v398_v28 = vadd.f32 %v351_v60, %v335_v59  ;;  %v411_v29 = vadd.f32 %v410_v20, %v396_v10  ;;  %v311_v30 = vadd.s32 %v1014_v3, %v294_v40  ;;  %v260_v60 = vld [vmem:[%s998_s7 + $0x70] sm:$0xff] }
  0x6a   : > { %vm325_vm11 = vcmp.lt.s32.totalorder %v309_v12, 128  ;;  %v339_v31 = vsel %vm323_vm9, %v255_v15, 0.0  ;;  %v355_v32 = vsel %vm323_vm9, %v271_v16, 0.0  ;;  %v370_v35 = vmul.f32 %v354_v23, %v338_v22 }
  0x6b   : > { %v383_v36 = vadd.f32 %v382_v27, %v368_v17  ;;  %v399_v37 = vadd.f32 %v352_v6, %v336_v5  ;;  %v412_v38 = vadd.f32 %v411_v29, %v397_v19  ;;  %v312_v39 = vadd.s32 %v1014_v3, %v1049_v45  ;;  %v277_v5 = vld [vmem:[%s1004_s8 + $0x78] sm:$0xff] }
  0x6c   : > { %vm326_vm12 = vcmp.lt.s32.totalorder %v310_v21, 128  ;;  %v340_v41 = vsel %vm324_vm10, %v256_v24, 0.0  ;;  %v356_v40 = vsel %vm324_vm10, %v272_v25, 0.0  ;;  %v371_v44 = vmul.f32 %v355_v32, %v339_v31 }
  0x6d   : > { %v384_v46 = vadd.f32 %v383_v36, %v369_v26  ;;  %v400_v47 = vadd.f32 %v353_v14, %v337_v13  ;;  %v413_v48 = vadd.f32 %v412_v38, %v398_v28  ;;  %v313_v49 = vadd.s32 %v1014_v3, %v296_v57  ;;  %v276_v3 = vld [vmem:[%s1004_s8 + $0x70] sm:$0xff] }
  0x6e   : > { %vm327_vm13 = vcmp.lt.s32.totalorder %v311_v30, 128  ;;  %v341_v50 = vsel %vm325_vm11, %v257_v33, 0.0  ;;  %v357_v45 = vsel %vm325_vm11, %v273_v34, 0.0  ;;  %v372_v53 = vmul.f32 %v356_v40, %v340_v41 }
  0x6f   : > { %v385_v54 = vadd.f32 %v384_v46, %v370_v35  ;;  %v401_v55 = vadd.f32 %v354_v23, %v338_v22  ;;  %v414_v56 = vadd.f32 %v413_v48, %v399_v37  ;;  %vm328_vm14 = vcmp.lt.s32.totalorder %v312_v39, 128 }
  0x70   : > { %v342_v58 = vsel %vm326_vm12, %v258_v42, 0.0  ;;  %v358_v59 = vsel %vm326_vm12, %v274_v43, 0.0  ;;  %v373_v57 = vmul.f32 %v357_v45, %v341_v50  ;;  %v402_v62 = vadd.f32 %v355_v32, %v339_v31 }
  0x71   : > { %v386_v61 = vadd.f32 %v385_v54, %v371_v44  ;;  %v415_v63 = vadd.f32 %v414_v56, %v400_v47  ;;  %vm329_vm15 = vcmp.lt.s32.totalorder %v313_v49, 128  ;;  %v343_v0 = vsel %vm327_vm13, %v259_v51, 0.0 }
  0x72   : > { %v359_v2 = vsel %vm327_vm13, %v275_v52, 0.0  ;;  %v374_v6 = vmul.f32 %v358_v59, %v342_v58  ;;  %v403_v7 = vadd.f32 %v356_v40, %v340_v41  ;;  %v344_v9 = vsel %vm328_vm14, %v260_v60, 0.0 }
  0x73   : > { %v387_v1 = vadd.f32 %v386_v61, %v372_v53  ;;  %v416_v8 = vadd.f32 %v415_v63, %v401_v55  ;;  %v360_v10 = vsel %vm328_vm14, %v276_v3, 0.0  ;;  %v375_v11 = vmul.f32 %v359_v2, %v343_v0 }
  0x74   : > { %v404_v13 = vadd.f32 %v357_v45, %v341_v50  ;;  %v345_v15 = vsel %vm329_vm15, %v261_v4, 0.0  ;;  %v361_v16 = vsel %vm329_vm15, %v277_v5, 0.0  ;;  %v376_v17 = vmul.f32 %v360_v10, %v344_v9 }
  0x75   : > { %v388_v12 = vadd.f32 %v387_v1, %v373_v57  ;;  %v417_v14 = vadd.f32 %v416_v8, %v402_v62  ;;  %v405_v19 = vadd.f32 %v358_v59, %v342_v58  ;;  %v377_v21 = vmul.f32 %v361_v16, %v345_v15 }
  0x76   : > { %v406_v23 = vadd.f32 %v359_v2, %v343_v0  ;;  %v407_v26 = vadd.f32 %v360_v10, %v344_v9  ;;  %v408_v29 = vadd.f32 %v361_v16, %v345_v15 }
  0x77   : > { %v389_v18 = vadd.f32 %v388_v12, %v374_v6  ;;  %v418_v20 = vadd.f32 %v417_v14, %v403_v7 }
  0x79   : > { %v390_v22 = vadd.f32 %v389_v18, %v375_v11  ;;  %v419_v24 = vadd.f32 %v418_v20, %v404_v13 }
  0x7b   : > { %v391_v25 = vadd.f32 %v390_v22, %v376_v17  ;;  %v420_v27 = vadd.f32 %v419_v24, %v405_v19 }
  0x7d   : > { %v392_v28 = vadd.f32 %v391_v25, %v377_v21  ;;  %v421_v30 = vadd.f32 %v420_v27, %v406_v23 }
  0x7f   : > { %v422_v31 = vadd.f32 %v421_v30, %v407_v26  ;;  %426 = vst [vmem:[%s231_s3] sm:$0xff] %v392_v28 }
  0x81   : > { %v423_v32 = vadd.f32 %v422_v31, %v408_v29 }
  0x83   : > { %565 = vst [vmem:[%s231_s3 + $0x8] sm:$0xff] %v423_v32 }
  0x84   : > { %743 = shalt.err (!%p740_p7)
}
  0x85   : > { %s744_s6 = scalar_lea.hbm %s1109_s22, 256  ;;  %s748_s8 = scalar_lea.hbm %s1167_s2, 512 }
  0x86   : > { %p745_p13 = scmp.ne.s32.totalorder %s1109_s22, %s744_s6  ;;  %p749_p12 = scmp.lt.u32.totalorder %s1109_s22, %s1167_s2 }
  0x87   : > { %p750_p0 = scmp.lt.u32.totalorder %s748_s8, %s744_s6  ;;  %p752_p2 = scmp.lt.u32.totalorder %s744_s6, %s1109_s22 }
  0x88   : > { %p746_p4 = pnand %p745_p13, %p1178_p8 }
  0x89   : > { %p751_p5 = por %p750_p0, %p749_p12 }
  0x8a   : > { %p747_p6 = pneg %p746_p4 }
  0x8b   : > { %p753_p9 = por %p752_p2, %p751_p5 }
  0x8d   : > { %p754_p10 = pnand %p753_p9, %p747_p6 }
  0x8f   : > { %757 = shalt.err (!%p754_p10)
}
  0x90   : > { %s844_s20 = smov 128   ;;  %s845_s27 = smov 8  }
  0x91   : > { %578 = dma.vmem_to_hbm [thread:$0]  (%p1178_p8), %s1111_s28, 256, %s1109_s22, %s1113_s23, %s844_s20, %s844_s20, %s845_s27  }
  0x92 PF: > { %s460_s3 = sand.u32 1, %s809_s9   ;;  %p1179_p11 = scmp.ne.s32.totalorder %s1173_s26, 0 }
  0x93   : > { %p1180_p1 = scmp.ge.s32.totalorder %s837_s16, 2  ;;  %s461_s12 = scalar_lea.sflag [#allocation4], %s460_s3 }
  0x95   : > { %p588_p3 = pnand %p1180_p1, %p1179_p11 }
  0x97   : > { %803 = dma.done.wait (!%p588_p3), %s461_s12, 256  }
  0x98   : > { %805 = vsyncadd (!%p588_p3), %s461_s12, 4294967040  ;;  %s21_s16 = sadd.s32 1, %s837_s16   ;;  %s1181_s9 = smov %s813_s10 }
  0x99   : > { %p18_p7 = scmp.ge.s32.totalorder %s21_s16, 4   ;;  %s1182_s10 = smov %s817_s11 }
  0x9a   : > { %s1183_s11 = smov %s919_s24  ;;  %s1184_s12 = smov %s825_s13 }
  0x9b   : > { %s1155_s13 = smov 0   ;;  %s1185_s14 = smov %s833_s15 }
  0x9c   : > { %s1186_s15 = smov %s1188_s19  ;;  %20 = sbr.rel (!%p18_p7) target bundleno = 9 (0x9), region = 91 }
  0xa3   :  { %466 = vsyncpa [#allocation3], 1 }
  0xa4   :  { %468 = vsyncpa [#allocation3 + $0x1], 1 }
  0xa5   :  { %469 = vsyncpa [#allocation6], 1 }
  0xa6   :  { %471 = vsyncpa [#allocation6 + $0x1], 1 }
  0xa7   :  { %472 = vsyncpa [#allocation4], 1 }
  0xa8   :  { %474 = vsyncpa [#allocation4 + $0x1], 1 }

</bundles_post_ra>
